<compile_context>
chip_gen: v5e
topology: v5e:2x2
jax: 0.10.0
libtpu: 0.0.40
codegen_flags: <defaults>
</compile_context>

<pallas_src>
import functools

import jax
import jax.numpy as jnp
from jax.experimental import pallas as pl
from jax.experimental.pallas import tpu as pltpu

_LN_EPS = 1e-5


@functools.lru_cache(maxsize=None)
def _vmem_limit_bytes() -> int:
    """Generation-aware scoped-VMEM budget: ~3/4 of physical, capped at 100 MiB
    (v5e/v6e: 128 MiB -> 96 MiB; v7x: 64 MiB -> 48 MiB)."""
    try:
        cap = int(pltpu.get_tpu_info().vmem_capacity_bytes)
    except Exception:
        cap = 64 * 1024 * 1024  # conservative fallback (v7x-sized)
    return min((cap * 3) // 4, 100 * 1024 * 1024)


def _pick_tile(dim, target, quantum):
    """Largest t <= target with t % quantum == 0 and dim % t == 0, else dim."""
    if dim <= target:
        return dim
    t = (target // quantum) * quantum
    while t >= quantum:
        if dim % t == 0:
            return t
        t -= quantum
    return dim


# ----------------------------------------------------------------------------
# Fused attention block kernel:
#   full-width Q / K|V projections -> per-head softmax(QK^T [+causal]) V into a
#   head-concat scratch -> single out-proj matmul -> +residual -> LayerNorm
# Grid (B, T//tq); all weights use constant index maps (DMA'd once, resident).
# ----------------------------------------------------------------------------
def _attn_block_kernel(x_ref, kv_ref, wq_ref, bq_ref, wkv_ref, bkv_ref,
                       wo_ref, bo_ref, g_ref, beta_ref, *rest,
                       num_heads, eps, causal, need_probs):
    if need_probs:
        y_ref, p_ref, q_scr, kv_scr, o_scr, p_scr = rest
    else:
        y_ref, q_scr, kv_scr, o_scr = rest
        p_ref = p_scr = None

    tq, E = x_ref.shape[1], x_ref.shape[2]
    S = kv_ref.shape[1]
    H = num_heads
    Dh = E // H

    # Full-width projections (MXU column-saturated); bf16 operands, f32 acc.
    x_b = x_ref[0].astype(jnp.bfloat16)                      # (tq, E)
    src_b = kv_ref[0].astype(jnp.bfloat16)                   # (S, E)
    q_scr[...] = (jnp.dot(x_b, wq_ref[...],
                          preferred_element_type=jnp.float32)
                  + bq_ref[...]).astype(jnp.bfloat16)        # scale pre-folded
    kv_scr[...] = (jnp.dot(src_b, wkv_ref[...],
                           preferred_element_type=jnp.float32)
                   + bkv_ref[...]).astype(jnp.bfloat16)      # (S, 2E) = [K | V]

    if causal:
        q_row0 = pl.program_id(1) * tq                       # absolute query row

    # Static per-head loop; all accumulation goes through VMEM scratches
    # (o_scr, p_scr) so no f32 values are carried across iterations.
    for h in range(H):
        lo = h * Dh
        qh = q_scr[:, lo:lo + Dh]                            # (tq, Dh) bf16
        kh = kv_scr[:, lo:lo + Dh]                           # (S, Dh)  bf16
        vh = kv_scr[:, E + lo:E + lo + Dh]                   # (S, Dh)  bf16

        s = jax.lax.dot_general(qh, kh, (((1,), (1,)), ((), ())),
                                preferred_element_type=jnp.float32)  # (tq, S)
        if causal:
            row = jax.lax.broadcasted_iota(jnp.int32, (tq, S), 0) + q_row0
            col = jax.lax.broadcasted_iota(jnp.int32, (tq, S), 1)
            s = jnp.where(row >= col, s, -1e9)

        # softmax in f32; divide moved to EUP via approx reciprocal
        s = s - jnp.max(s, axis=-1, keepdims=True)
        e = jnp.exp(s)
        p = e * pl.reciprocal(jnp.sum(e, axis=-1, keepdims=True), approx=True)

        o = jnp.dot(p.astype(jnp.bfloat16), vh,
                    preferred_element_type=jnp.float32)      # (tq, Dh)
        o_scr[:, lo:lo + Dh] = o.astype(jnp.bfloat16)        # head-concat slice

        if need_probs:
            if h == 0:
                p_scr[...] = p
            else:
                p_scr[...] += p

    # Single fused out-projection + bias + residual + LayerNorm (post-norm).
    y = (jnp.dot(o_scr[...], wo_ref[...], preferred_element_type=jnp.float32)
         + bo_ref[...] + x_ref[0].astype(jnp.float32))       # residual re-read
    mu = jnp.mean(y, axis=-1, keepdims=True)
    yc = y - mu
    var = jnp.mean(yc * yc, axis=-1, keepdims=True)
    y_ref[0] = (yc * jax.lax.rsqrt(var + eps) * g_ref[...]
                + beta_ref[...]).astype(y_ref.dtype)

    if need_probs:
        p_ref[0] = (p_scr[...] * (1.0 / H)).astype(p_ref.dtype)


def _attention_block(x_bte, kv_bse, p, num_heads, ln_g, ln_b, *,
                     causal, need_probs):
    """x_bte: (B, T, E) query/residual; kv_bse: (B, S, E) key/value source."""
    B, T, E = x_bte.shape
    S = kv_bse.shape[1]
    H = num_heads
    Dh = E // H
    scale = float(Dh) ** -0.5

    bf = jnp.bfloat16
    # One-time weight prep (in a real model done once at parameter-load time):
    # fold the 1/sqrt(Dh) scale into Wq/bq; fuse K and V projections laterally.
    wq = (p["q_w"] * scale).astype(bf)                              # (E, E)
    bq = (p["q_b"] * scale).reshape(1, E).astype(jnp.float32)
    wkv = jnp.concatenate([p["k_w"], p["v_w"]], axis=1).astype(bf)  # (E, 2E)
    bkv = jnp.concatenate([p["k_b"], p["v_b"]]).reshape(1, 2 * E).astype(jnp.float32)
    wo = p["o_w"].astype(bf)                                        # (E, E)
    bo = p["o_b"].reshape(1, E).astype(jnp.float32)
    g2 = ln_g.reshape(1, E).astype(jnp.float32)
    b2 = ln_b.reshape(1, E).astype(jnp.float32)

    tq = _pick_tile(T, 512, 16)          # query tile (extra parallel grid axis)
    nq = T // tq
    grid = (B, nq)

    const2 = lambda b, qi: (0, 0)
    in_specs = [
        pl.BlockSpec((1, tq, E), lambda b, qi: (b, qi, 0)),   # query / residual
        pl.BlockSpec((1, S, E), lambda b, qi: (b, 0, 0)),     # k/v source (full)
        pl.BlockSpec((E, E), const2), pl.BlockSpec((1, E), const2),
        pl.BlockSpec((E, 2 * E), const2), pl.BlockSpec((1, 2 * E), const2),
        pl.BlockSpec((E, E), const2), pl.BlockSpec((1, E), const2),
        pl.BlockSpec((1, E), const2), pl.BlockSpec((1, E), const2),
    ]
    inputs = [x_bte, kv_bse, wq, bq, wkv, bkv, wo, bo, g2, b2]

    scratch_shapes = [
        pltpu.VMEM((tq, E), bf),         # Q (bf16, head slices taken per head)
        pltpu.VMEM((S, 2 * E), bf),      # [K | V]
        pltpu.VMEM((tq, E), bf),         # head-concat attention output
    ]
    if need_probs:
        scratch_shapes.append(pltpu.VMEM((tq, S), jnp.float32))   # prob sum
        out_shape = (jax.ShapeDtypeStruct((B, T, E), jnp.bfloat16),
                     jax.ShapeDtypeStruct((B, T, S), jnp.float32))
        out_specs = (pl.BlockSpec((1, tq, E), lambda b, qi: (b, qi, 0)),
                     pl.BlockSpec((1, tq, S), lambda b, qi: (b, qi, 0)))
    else:
        out_shape = jax.ShapeDtypeStruct((B, T, E), jnp.bfloat16)
        out_specs = pl.BlockSpec((1, tq, E), lambda b, qi: (b, qi, 0))

    out = pl.pallas_call(
        functools.partial(_attn_block_kernel, num_heads=H, eps=_LN_EPS,
                          causal=causal, need_probs=need_probs),
        out_shape=out_shape,
        grid=grid,
        in_specs=in_specs,
        out_specs=out_specs,
        scratch_shapes=scratch_shapes,
        compiler_params=pltpu.CompilerParams(
            dimension_semantics=("parallel", "parallel"),
            vmem_limit_bytes=_vmem_limit_bytes()),
    )(*inputs)

    if need_probs:
        return out[0], out[1]
    return out, None


# ----------------------------------------------------------------------------
# Fused FFN block kernel: fc1 -> relu -> fc2 -> +residual -> LayerNorm
# Grid (row_tiles, ffn_tiles); fc2 accumulated over the ffn axis in an f32 VMEM
# scratch; the (rows, F) intermediate never touches HBM.
# ----------------------------------------------------------------------------
def _ffn_kernel(x_ref, w1_ref, b1_ref, w2_ref, b2_ref, g_ref, beta_ref,
                o_ref, acc_ref, *, eps):
    j = pl.program_id(1)

    @pl.when(j == 0)
    def _init():
        acc_ref[...] = jnp.zeros_like(acc_ref)

    # x is already bf16 (inter-kernel activations are bf16), so this cast is a
    # no-op and needs no hoisting/caching scratch.
    x_b = x_ref[...].astype(jnp.bfloat16)
    h = jnp.dot(x_b, w1_ref[...], preferred_element_type=jnp.float32) + b1_ref[...]
    h = jnp.maximum(h, 0.0)                                   # relu (f32)
    acc_ref[...] += jnp.dot(h.astype(jnp.bfloat16), w2_ref[...],
                            preferred_element_type=jnp.float32)

    @pl.when(j == pl.num_programs(1) - 1)
    def _finalize():
        y = acc_ref[...] + b2_ref[...] + x_ref[...].astype(jnp.float32)
        mu = jnp.mean(y, axis=-1, keepdims=True)
        yc = y - mu
        var = jnp.mean(yc * yc, axis=-1, keepdims=True)
        o_ref[...] = (yc * jax.lax.rsqrt(var + eps) * g_ref[...]
                      + beta_ref[...]).astype(o_ref.dtype)


def _ffn_block(x2d, params, ln_g, ln_b):
    N, E = x2d.shape
    F = params["fc1_w"].shape[1]
    w1 = params["fc1_w"].astype(jnp.bfloat16)
    w2 = params["fc2_w"].astype(jnp.bfloat16)
    b1 = params["fc1_b"].reshape(1, F).astype(jnp.float32)
    b2 = params["fc2_b"].reshape(1, E).astype(jnp.float32)
    g2 = ln_g.reshape(1, E).astype(jnp.float32)
    bb = ln_b.reshape(1, E).astype(jnp.float32)

    tm = _pick_tile(N, 512, 16)      # row tile (sublane-aligned)
    tf = _pick_tile(F, 1024, 128)    # ffn tile (lane-aligned)
    grid = (N // tm, F // tf)

    return pl.pallas_call(
        functools.partial(_ffn_kernel, eps=_LN_EPS),
        out_shape=jax.ShapeDtypeStruct((N, E), jnp.float32),
        grid=grid,
        in_specs=[
            pl.BlockSpec((tm, E), lambda i, j: (i, 0)),
            pl.BlockSpec((E, tf), lambda i, j: (0, j)),
            pl.BlockSpec((1, tf), lambda i, j: (0, j)),
            pl.BlockSpec((tf, E), lambda i, j: (j, 0)),
            pl.BlockSpec((1, E), lambda i, j: (0, 0)),
            pl.BlockSpec((1, E), lambda i, j: (0, 0)),
            pl.BlockSpec((1, E), lambda i, j: (0, 0)),
        ],
        out_specs=pl.BlockSpec((tm, E), lambda i, j: (i, 0)),
        scratch_shapes=[pltpu.VMEM((tm, E), jnp.float32)],
        compiler_params=pltpu.CompilerParams(
            dimension_semantics=("parallel", "arbitrary"),
            vmem_limit_bytes=_vmem_limit_bytes()),
    )(x2d, w1, b1, w2, b2, g2, bb)


# ----------------------------------------------------------------------------
# Full decoder layer forward (post-norm, dense FFN, eval / no dropout)
# ----------------------------------------------------------------------------
def decoder_layer_forward(x, encoder_out, params, num_heads, *, need_attn=True):
    """x: (T, B, E); encoder_out: (S, B, E). Causal self-attn mask is built
    in-kernel (fairseq buffered_future_mask analogue)."""
    T, B, E = x.shape

    # One-time layout change to batch-major; the whole layer runs in (B, T, E).
    xb = jnp.transpose(x, (1, 0, 2))
    encb = jnp.transpose(encoder_out, (1, 0, 2))

    # self-attention block (no attention-prob output at all)
    xb, _ = _attention_block(
        xb, xb, params["self_attn"], num_heads,
        params["self_ln_g"], params["self_ln_b"],
        causal=True, need_probs=False)

    # encoder-decoder attention block (head-averaged attn weights in-kernel,
    # gated behind need_attn)
    xb, attn = _attention_block(
        xb, encb, params["enc_attn"], num_heads,
        params["enc_ln_g"], params["enc_ln_b"],
        causal=False, need_probs=need_attn)

    # FFN block (input bf16, final output f32)
    y2d = _ffn_block(xb.reshape(B * T, E), params,
                     params["final_ln_g"], params["final_ln_b"])
    xb = y2d.reshape(B, T, E)

    return jnp.transpose(xb, (1, 0, 2)), attn, None, None


# ----------------------------------------------------------------------------
# Pure-JAX reference (mirrors the kernel's bf16 casts; for checking only)
# ----------------------------------------------------------------------------
def _bf16_mm(a, w):
    return jax.lax.dot_general(
        a.astype(jnp.bfloat16), w.astype(jnp.bfloat16),
        (((a.ndim - 1,), (0,)), ((), ())), preferred_element_type=jnp.float32)


def _ref_ln(x, g, b, eps=_LN_EPS):
    mu = x.mean(-1, keepdims=True)
    var = ((x - mu) ** 2).mean(-1, keepdims=True)
    return (x - mu) * jax.lax.rsqrt(var + eps) * g + b


def _ref_attn_block(x_bte, kv_bse, p, H, causal, ln_g, ln_b):
    B, T, E = x_bte.shape
    S = kv_bse.shape[1]
    Dh = E // H
    scale = float(Dh) ** -0.5
    bf = jnp.bfloat16

    q = _bf16_mm(x_bte.reshape(B * T, E), p["q_w"] * scale) + p["q_b"] * scale
    k = _bf16_mm(kv_bse.reshape(B * S, E), p["k_w"]) + p["k_b"]
    v = _bf16_mm(kv_bse.reshape(B * S, E), p["v_w"]) + p["v_b"]
    q = q.reshape(B, T, H, Dh).transpose(0, 2, 1, 3)
    k = k.reshape(B, S, H, Dh).transpose(0, 2, 1, 3)
    v = v.reshape(B, S, H, Dh).transpose(0, 2, 1, 3)

    s = jnp.einsum("bhtd,bhsd->bhts", q.astype(bf), k.astype(bf),
                   preferred_element_type=jnp.float32)
    if causal:
        msk = jnp.arange(T)[:, None] >= jnp.arange(S)[None, :]
        s = jnp.where(msk[None, None], s, -1e9)
    pw = jax.nn.softmax(s, axis=-1)
    o = jnp.einsum("bhts,bhsd->bhtd", pw.astype(bf), v.astype(bf),
                   preferred_element_type=jnp.float32)
    o = o.transpose(0, 2, 1, 3).reshape(B * T, E)
    out = (_bf16_mm(o, p["o_w"]) + p["o_b"]).reshape(B, T, E)
    y = _ref_ln(out + x_bte.astype(jnp.float32), ln_g, ln_b)
    return y, pw.mean(axis=1)


def _ref_ffn(x_bte, params, ln_g, ln_b):
    B, T, E = x_bte.shape
    x2 = x_bte.reshape(B * T, E)
    h = jnp.maximum(_bf16_mm(x2, params["fc1_w"]) + params["fc1_b"], 0.0)
    y = _bf16_mm(h, params["fc2_w"]) + params["fc2_b"] + x2.astype(jnp.float32)
    return _ref_ln(y, ln_g, ln_b).reshape(B, T, E)


def _ref_forward(x_tbe, enc_sbe, params, H):
    xb = jnp.transpose(x_tbe, (1, 0, 2))
    encb = jnp.transpose(enc_sbe, (1, 0, 2))
    xb, _ = _ref_attn_block(xb, xb, params["self_attn"], H, True,
                            params["self_ln_g"], params["self_ln_b"])
    xb = xb.astype(jnp.bfloat16)     # mirror kernel's bf16 inter-block dtype
    xb, attn = _ref_attn_block(xb, encb, params["enc_attn"], H, False,
                               params["enc_ln_g"], params["enc_ln_b"])
    xb = xb.astype(jnp.bfloat16)
    xb = _ref_ffn(xb, params, params["final_ln_g"], params["final_ln_b"])
    return jnp.transpose(xb, (1, 0, 2)), attn


# ----------------------------------------------------------------------------
# Parameter construction (deterministic, synthetic)
# ----------------------------------------------------------------------------
def make_params(key, E, F):
    ks = jax.random.split(key, 20)

    def w(k, shp, s=0.05):
        return jax.random.normal(k, shp, jnp.float32) * s

    def attn_params(base):
        return {
            "q_w": w(ks[base + 0], (E, E)), "q_b": w(ks[base + 1], (E,)),
            "k_w": w(ks[base + 2], (E, E)), "k_b": w(ks[base + 3], (E,)),
            "v_w": w(ks[base + 4], (E, E)), "v_b": w(ks[base + 5], (E,)),
            "o_w": w(ks[base + 6], (E, E)), "o_b": w(ks[base + 7], (E,)),
        }

    return {
        "self_attn": attn_params(0),
        "enc_attn": attn_params(8),
        "fc1_w": w(ks[16], (E, F)), "fc1_b": w(ks[17], (F,)),
        "fc2_w": w(ks[18], (F, E)), "fc2_b": w(ks[19], (E,)),
        "self_ln_g": jnp.ones((E,), jnp.float32), "self_ln_b": jnp.zeros((E,), jnp.float32),
        "enc_ln_g": jnp.ones((E,), jnp.float32), "enc_ln_b": jnp.zeros((E,), jnp.float32),
        "final_ln_g": jnp.ones((E,), jnp.float32), "final_ln_b": jnp.zeros((E,), jnp.float32),
    }


if __name__ == "__main__":
    T, S, B, E, H, F = 8, 8, 2, 32, 4, 64  # tgt, src, batch, embed, heads, ffn

    key = jax.random.PRNGKey(0)
    kx, kenc, kp = jax.random.split(key, 3)
    x = jax.random.normal(kx, (T, B, E), jnp.float32)            # (seq, batch, embed)
    encoder_out = jax.random.normal(kenc, (S, B, E), jnp.float32)
    params = make_params(kp, E, F)

    out, attn, _, l_aux = decoder_layer_forward(x, encoder_out, params, H,
                                                need_attn=True)
    out = jax.block_until_ready(out)
    attn = jax.block_until_ready(attn)

    ref_out, ref_attn = _ref_forward(x, encoder_out, params, H)
    assert out.shape == (T, B, E)
    assert attn.shape == (B, T, S)
    # bf16 matmul operands / inter-block activations + approx reciprocal softmax
    assert jnp.allclose(out, ref_out, atol=2e-2, rtol=2e-2), "output mismatch vs. reference"
    assert jnp.allclose(attn, ref_attn, atol=2e-2, rtol=2e-2), "attn-weight mismatch vs. reference"

    print("KERNEL_OK")
</pallas_src>

<mosaic_0001>
module attributes {stable_mosaic.version = 11 : i64} {
  func.func @_attn_block_kernel(%arg0: i32, %arg1: i32, %arg2: memref<1x8x32xf32, #tpu.memory_space<vmem>>, %arg3: memref<1x8x32xf32, #tpu.memory_space<vmem>>, %arg4: memref<32x32xbf16, #tpu.memory_space<vmem>>, %arg5: memref<1x32xf32, #tpu.memory_space<vmem>>, %arg6: memref<32x64xbf16, #tpu.memory_space<vmem>>, %arg7: memref<1x64xf32, #tpu.memory_space<vmem>>, %arg8: memref<32x32xbf16, #tpu.memory_space<vmem>>, %arg9: memref<1x32xf32, #tpu.memory_space<vmem>>, %arg10: memref<1x32xf32, #tpu.memory_space<vmem>>, %arg11: memref<1x32xf32, #tpu.memory_space<vmem>>, %arg12: memref<1x8x32xbf16, #tpu.memory_space<vmem>>, %arg13: memref<8x32xbf16, #tpu.memory_space<vmem>>, %arg14: memref<8x64xbf16, #tpu.memory_space<vmem>>, %arg15: memref<8x32xbf16, #tpu.memory_space<vmem>>) attributes {dimension_semantics = [#tpu.dimension_semantics<parallel>, #tpu.dimension_semantics<parallel>], iteration_bounds = array<i64: 2, 1>, scalar_prefetch = 0 : i64, scratch_operands = 3 : i64, tpu.core_type = #tpu.core_type<tc>, window_params = [{transform_indices = @transform_0, window_bounds = array<i64: 1, 8, 32>}, {transform_indices = @transform_1, window_bounds = array<i64: 1, 8, 32>}, {pipeline_mode = #tpu.pipeline_mode<synchronous>, transform_indices = @transform_2, window_bounds = array<i64: 32, 32>}, {pipeline_mode = #tpu.pipeline_mode<synchronous>, transform_indices = @transform_3, window_bounds = array<i64: 1, 32>}, {pipeline_mode = #tpu.pipeline_mode<synchronous>, transform_indices = @transform_4, window_bounds = array<i64: 32, 64>}, {pipeline_mode = #tpu.pipeline_mode<synchronous>, transform_indices = @transform_5, window_bounds = array<i64: 1, 64>}, {pipeline_mode = #tpu.pipeline_mode<synchronous>, transform_indices = @transform_6, window_bounds = array<i64: 32, 32>}, {pipeline_mode = #tpu.pipeline_mode<synchronous>, transform_indices = @transform_7, window_bounds = array<i64: 1, 32>}, {pipeline_mode = #tpu.pipeline_mode<synchronous>, transform_indices = @transform_8, window_bounds = array<i64: 1, 32>}, {pipeline_mode = #tpu.pipeline_mode<synchronous>, transform_indices = @transform_9, window_bounds = array<i64: 1, 32>}, {transform_indices = @transform_10, window_bounds = array<i64: 1, 8, 32>}]} {
    %c0 = arith.constant 0 : index
    %c0_0 = arith.constant 0 : index
    %c0_1 = arith.constant 0 : index
    %0 = vector.load %arg2[%c0, %c0_0, %c0_1] : memref<1x8x32xf32, #tpu.memory_space<vmem>>, vector<1x8x32xf32>
    %1 = vector.shape_cast %0 : vector<1x8x32xf32> to vector<8x32xf32>
    %2 = arith.truncf %1 : vector<8x32xf32> to vector<8x32xbf16>
    %c0_2 = arith.constant 0 : index
    %c0_3 = arith.constant 0 : index
    %c0_4 = arith.constant 0 : index
    %3 = vector.load %arg3[%c0_2, %c0_3, %c0_4] : memref<1x8x32xf32, #tpu.memory_space<vmem>>, vector<1x8x32xf32>
    %4 = vector.shape_cast %3 : vector<1x8x32xf32> to vector<8x32xf32>
    %5 = arith.truncf %4 : vector<8x32xf32> to vector<8x32xbf16>
    %c0_5 = arith.constant 0 : index
    %c0_6 = arith.constant 0 : index
    %6 = vector.load %arg4[%c0_5, %c0_6] : memref<32x32xbf16, #tpu.memory_space<vmem>>, vector<32x32xbf16>
    %cst = arith.constant dense<0.000000e+00> : vector<8x32xf32>
    %7 = tpu.matmul %2, %6, %cst {dimension_numbers = #tpu.dot_dimension_numbers<[1], [0], [0], [1], [0, 0, 1, 1], [], []>} : vector<8x32xbf16>, vector<32x32xbf16>, vector<8x32xf32> -> vector<8x32xf32>
    %c0_7 = arith.constant 0 : index
    %c0_8 = arith.constant 0 : index
    %8 = vector.load %arg5[%c0_7, %c0_8] : memref<1x32xf32, #tpu.memory_space<vmem>>, vector<1x32xf32>
    %9 = vector.broadcast %8 : vector<1x32xf32> to vector<8x32xf32>
    %10 = arith.addf %7, %9 : vector<8x32xf32>
    %11 = arith.truncf %10 : vector<8x32xf32> to vector<8x32xbf16>
    %c0_9 = arith.constant 0 : index
    %c0_10 = arith.constant 0 : index
    %12 = vector.load %arg13[%c0_9, %c0_10] : memref<8x32xbf16, #tpu.memory_space<vmem>>, vector<8x32xbf16>
    tpu.vector_store %arg13[%c0_9, %c0_10], %11 {strides = array<i32>} : memref<8x32xbf16, #tpu.memory_space<vmem>>, vector<8x32xbf16>,
    %c0_11 = arith.constant 0 : index
    %c0_12 = arith.constant 0 : index
    %13 = vector.load %arg6[%c0_11, %c0_12] : memref<32x64xbf16, #tpu.memory_space<vmem>>, vector<32x64xbf16>
    %cst_13 = arith.constant dense<0.000000e+00> : vector<8x64xf32>
    %14 = tpu.matmul %5, %13, %cst_13 {dimension_numbers = #tpu.dot_dimension_numbers<[1], [0], [0], [1], [0, 0, 1, 1], [], []>} : vector<8x32xbf16>, vector<32x64xbf16>, vector<8x64xf32> -> vector<8x64xf32>
    %c0_14 = arith.constant 0 : index
    %c0_15 = arith.constant 0 : index
    %15 = vector.load %arg7[%c0_14, %c0_15] : memref<1x64xf32, #tpu.memory_space<vmem>>, vector<1x64xf32>
    %16 = vector.broadcast %15 : vector<1x64xf32> to vector<8x64xf32>
    %17 = arith.addf %14, %16 : vector<8x64xf32>
    %18 = arith.truncf %17 : vector<8x64xf32> to vector<8x64xbf16>
    %c0_16 = arith.constant 0 : index
    %c0_17 = arith.constant 0 : index
    %19 = vector.load %arg14[%c0_16, %c0_17] : memref<8x64xbf16, #tpu.memory_space<vmem>>, vector<8x64xbf16>
    tpu.vector_store %arg14[%c0_16, %c0_17], %18 {strides = array<i32>} : memref<8x64xbf16, #tpu.memory_space<vmem>>, vector<8x64xbf16>,
    %c8_i32 = arith.constant 8 : i32
    %20 = arith.muli %arg1, %c8_i32 : i32
    %c0_18 = arith.constant 0 : index
    %c0_19 = arith.constant 0 : index
    %21 = vector.load %arg13[%c0_18, %c0_19] : memref<8x32xbf16, #tpu.memory_space<vmem>>, vector<8x8xbf16>
    %c0_20 = arith.constant 0 : index
    %c0_21 = arith.constant 0 : index
    %22 = vector.load %arg14[%c0_20, %c0_21] : memref<8x64xbf16, #tpu.memory_space<vmem>>, vector<8x8xbf16>
    %c0_22 = arith.constant 0 : index
    %c32 = arith.constant 32 : index
    %23 = vector.load %arg14[%c0_22, %c32] : memref<8x64xbf16, #tpu.memory_space<vmem>>, vector<8x8xbf16>
    %cst_23 = arith.constant dense<0.000000e+00> : vector<8x8xf32>
    %24 = tpu.matmul %21, %22, %cst_23 {dimension_numbers = #tpu.dot_dimension_numbers<[1], [1], [0], [0], [0, 0, 1, 0], [], []>} : vector<8x8xbf16>, vector<8x8xbf16>, vector<8x8xf32> -> vector<8x8xf32>
    %25 = tpu.iota {dimensions = array<i32: 0>} : vector<8x8xi32>
    %26 = vector.broadcast %20 : i32 to vector<8x8xi32>
    %27 = arith.addi %25, %26 : vector<8x8xi32>
    %28 = tpu.iota {dimensions = array<i32: 1>} : vector<8x8xi32>
    %29 = arith.cmpi sge, %27, %28 : vector<8x8xi32>
    %cst_24 = arith.constant -1.000000e+09 : f32
    %30 = vector.broadcast %cst_24 : f32 to vector<8x8xf32>
    %31 = arith.select %29, %24, %30 : vector<8x8xi1>, vector<8x8xf32>
    %cst_25 = arith.constant dense<0xFF800000> : vector<8xf32>
    %32 = vector.multi_reduction <maximumf>, %31, %cst_25 [1] : vector<8x8xf32> to vector<8xf32>
    %33 = vector.shape_cast %32 : vector<8xf32> to vector<8x1xf32>
    %34 = vector.broadcast %33 : vector<8x1xf32> to vector<8x8xf32>
    %35 = arith.subf %31, %34 : vector<8x8xf32>
    %36 = math.exp %35 : vector<8x8xf32>
    %cst_26 = arith.constant dense<0.000000e+00> : vector<8xf32>
    %37 = vector.multi_reduction <add>, %36, %cst_26 [1] : vector<8x8xf32> to vector<8xf32>
    %38 = vector.shape_cast %37 : vector<8xf32> to vector<8x1xf32>
    %39 = tpu.reciprocal %38 {approx = true} : vector<8x1xf32> -> vector<8x1xf32>
    %40 = vector.broadcast %39 : vector<8x1xf32> to vector<8x8xf32>
    %41 = arith.mulf %36, %40 : vector<8x8xf32>
    %42 = arith.truncf %41 : vector<8x8xf32> to vector<8x8xbf16>
    %cst_27 = arith.constant dense<0.000000e+00> : vector<8x8xf32>
    %43 = tpu.matmul %42, %23, %cst_27 {dimension_numbers = #tpu.dot_dimension_numbers<[1], [0], [0], [1], [0, 0, 1, 1], [], []>} : vector<8x8xbf16>, vector<8x8xbf16>, vector<8x8xf32> -> vector<8x8xf32>
    %44 = arith.truncf %43 : vector<8x8xf32> to vector<8x8xbf16>
    %c0_28 = arith.constant 0 : index
    %c0_29 = arith.constant 0 : index
    %45 = vector.load %arg15[%c0_28, %c0_29] : memref<8x32xbf16, #tpu.memory_space<vmem>>, vector<8x8xbf16>
    tpu.vector_store %arg15[%c0_28, %c0_29], %44 {strides = array<i32>} : memref<8x32xbf16, #tpu.memory_space<vmem>>, vector<8x8xbf16>,
    %c0_30 = arith.constant 0 : index
    %c8 = arith.constant 8 : index
    %46 = vector.load %arg13[%c0_30, %c8] : memref<8x32xbf16, #tpu.memory_space<vmem>>, vector<8x8xbf16>
    %c0_31 = arith.constant 0 : index
    %c8_32 = arith.constant 8 : index
    %47 = vector.load %arg14[%c0_31, %c8_32] : memref<8x64xbf16, #tpu.memory_space<vmem>>, vector<8x8xbf16>
    %c0_33 = arith.constant 0 : index
    %c40 = arith.constant 40 : index
    %48 = vector.load %arg14[%c0_33, %c40] : memref<8x64xbf16, #tpu.memory_space<vmem>>, vector<8x8xbf16>
    %cst_34 = arith.constant dense<0.000000e+00> : vector<8x8xf32>
    %49 = tpu.matmul %46, %47, %cst_34 {dimension_numbers = #tpu.dot_dimension_numbers<[1], [1], [0], [0], [0, 0, 1, 0], [], []>} : vector<8x8xbf16>, vector<8x8xbf16>, vector<8x8xf32> -> vector<8x8xf32>
    %50 = tpu.iota {dimensions = array<i32: 0>} : vector<8x8xi32>
    %51 = vector.broadcast %20 : i32 to vector<8x8xi32>
    %52 = arith.addi %50, %51 : vector<8x8xi32>
    %53 = tpu.iota {dimensions = array<i32: 1>} : vector<8x8xi32>
    %54 = arith.cmpi sge, %52, %53 : vector<8x8xi32>
    %cst_35 = arith.constant -1.000000e+09 : f32
    %55 = vector.broadcast %cst_35 : f32 to vector<8x8xf32>
    %56 = arith.select %54, %49, %55 : vector<8x8xi1>, vector<8x8xf32>
    %cst_36 = arith.constant dense<0xFF800000> : vector<8xf32>
    %57 = vector.multi_reduction <maximumf>, %56, %cst_36 [1] : vector<8x8xf32> to vector<8xf32>
    %58 = vector.shape_cast %57 : vector<8xf32> to vector<8x1xf32>
    %59 = vector.broadcast %58 : vector<8x1xf32> to vector<8x8xf32>
    %60 = arith.subf %56, %59 : vector<8x8xf32>
    %61 = math.exp %60 : vector<8x8xf32>
    %cst_37 = arith.constant dense<0.000000e+00> : vector<8xf32>
    %62 = vector.multi_reduction <add>, %61, %cst_37 [1] : vector<8x8xf32> to vector<8xf32>
    %63 = vector.shape_cast %62 : vector<8xf32> to vector<8x1xf32>
    %64 = tpu.reciprocal %63 {approx = true} : vector<8x1xf32> -> vector<8x1xf32>
    %65 = vector.broadcast %64 : vector<8x1xf32> to vector<8x8xf32>
    %66 = arith.mulf %61, %65 : vector<8x8xf32>
    %67 = arith.truncf %66 : vector<8x8xf32> to vector<8x8xbf16>
    %cst_38 = arith.constant dense<0.000000e+00> : vector<8x8xf32>
    %68 = tpu.matmul %67, %48, %cst_38 {dimension_numbers = #tpu.dot_dimension_numbers<[1], [0], [0], [1], [0, 0, 1, 1], [], []>} : vector<8x8xbf16>, vector<8x8xbf16>, vector<8x8xf32> -> vector<8x8xf32>
    %69 = arith.truncf %68 : vector<8x8xf32> to vector<8x8xbf16>
    %c0_39 = arith.constant 0 : index
    %c8_40 = arith.constant 8 : index
    %70 = vector.load %arg15[%c0_39, %c8_40] : memref<8x32xbf16, #tpu.memory_space<vmem>>, vector<8x8xbf16>
    tpu.vector_store %arg15[%c0_39, %c8_40], %69 {strides = array<i32>} : memref<8x32xbf16, #tpu.memory_space<vmem>>, vector<8x8xbf16>,
    %c0_41 = arith.constant 0 : index
    %c16 = arith.constant 16 : index
    %71 = vector.load %arg13[%c0_41, %c16] : memref<8x32xbf16, #tpu.memory_space<vmem>>, vector<8x8xbf16>
    %c0_42 = arith.constant 0 : index
    %c16_43 = arith.constant 16 : index
    %72 = vector.load %arg14[%c0_42, %c16_43] : memref<8x64xbf16, #tpu.memory_space<vmem>>, vector<8x8xbf16>
    %c0_44 = arith.constant 0 : index
    %c48 = arith.constant 48 : index
    %73 = vector.load %arg14[%c0_44, %c48] : memref<8x64xbf16, #tpu.memory_space<vmem>>, vector<8x8xbf16>
    %cst_45 = arith.constant dense<0.000000e+00> : vector<8x8xf32>
    %74 = tpu.matmul %71, %72, %cst_45 {dimension_numbers = #tpu.dot_dimension_numbers<[1], [1], [0], [0], [0, 0, 1, 0], [], []>} : vector<8x8xbf16>, vector<8x8xbf16>, vector<8x8xf32> -> vector<8x8xf32>
    %75 = tpu.iota {dimensions = array<i32: 0>} : vector<8x8xi32>
    %76 = vector.broadcast %20 : i32 to vector<8x8xi32>
    %77 = arith.addi %75, %76 : vector<8x8xi32>
    %78 = tpu.iota {dimensions = array<i32: 1>} : vector<8x8xi32>
    %79 = arith.cmpi sge, %77, %78 : vector<8x8xi32>
    %cst_46 = arith.constant -1.000000e+09 : f32
    %80 = vector.broadcast %cst_46 : f32 to vector<8x8xf32>
    %81 = arith.select %79, %74, %80 : vector<8x8xi1>, vector<8x8xf32>
    %cst_47 = arith.constant dense<0xFF800000> : vector<8xf32>
    %82 = vector.multi_reduction <maximumf>, %81, %cst_47 [1] : vector<8x8xf32> to vector<8xf32>
    %83 = vector.shape_cast %82 : vector<8xf32> to vector<8x1xf32>
    %84 = vector.broadcast %83 : vector<8x1xf32> to vector<8x8xf32>
    %85 = arith.subf %81, %84 : vector<8x8xf32>
    %86 = math.exp %85 : vector<8x8xf32>
    %cst_48 = arith.constant dense<0.000000e+00> : vector<8xf32>
    %87 = vector.multi_reduction <add>, %86, %cst_48 [1] : vector<8x8xf32> to vector<8xf32>
    %88 = vector.shape_cast %87 : vector<8xf32> to vector<8x1xf32>
    %89 = tpu.reciprocal %88 {approx = true} : vector<8x1xf32> -> vector<8x1xf32>
    %90 = vector.broadcast %89 : vector<8x1xf32> to vector<8x8xf32>
    %91 = arith.mulf %86, %90 : vector<8x8xf32>
    %92 = arith.truncf %91 : vector<8x8xf32> to vector<8x8xbf16>
    %cst_49 = arith.constant dense<0.000000e+00> : vector<8x8xf32>
    %93 = tpu.matmul %92, %73, %cst_49 {dimension_numbers = #tpu.dot_dimension_numbers<[1], [0], [0], [1], [0, 0, 1, 1], [], []>} : vector<8x8xbf16>, vector<8x8xbf16>, vector<8x8xf32> -> vector<8x8xf32>
    %94 = arith.truncf %93 : vector<8x8xf32> to vector<8x8xbf16>
    %c0_50 = arith.constant 0 : index
    %c16_51 = arith.constant 16 : index
    %95 = vector.load %arg15[%c0_50, %c16_51] : memref<8x32xbf16, #tpu.memory_space<vmem>>, vector<8x8xbf16>
    tpu.vector_store %arg15[%c0_50, %c16_51], %94 {strides = array<i32>} : memref<8x32xbf16, #tpu.memory_space<vmem>>, vector<8x8xbf16>,
    %c0_52 = arith.constant 0 : index
    %c24 = arith.constant 24 : index
    %96 = vector.load %arg13[%c0_52, %c24] : memref<8x32xbf16, #tpu.memory_space<vmem>>, vector<8x8xbf16>
    %c0_53 = arith.constant 0 : index
    %c24_54 = arith.constant 24 : index
    %97 = vector.load %arg14[%c0_53, %c24_54] : memref<8x64xbf16, #tpu.memory_space<vmem>>, vector<8x8xbf16>
    %c0_55 = arith.constant 0 : index
    %c56 = arith.constant 56 : index
    %98 = vector.load %arg14[%c0_55, %c56] : memref<8x64xbf16, #tpu.memory_space<vmem>>, vector<8x8xbf16>
    %cst_56 = arith.constant dense<0.000000e+00> : vector<8x8xf32>
    %99 = tpu.matmul %96, %97, %cst_56 {dimension_numbers = #tpu.dot_dimension_numbers<[1], [1], [0], [0], [0, 0, 1, 0], [], []>} : vector<8x8xbf16>, vector<8x8xbf16>, vector<8x8xf32> -> vector<8x8xf32>
    %100 = tpu.iota {dimensions = array<i32: 0>} : vector<8x8xi32>
    %101 = vector.broadcast %20 : i32 to vector<8x8xi32>
    %102 = arith.addi %100, %101 : vector<8x8xi32>
    %103 = tpu.iota {dimensions = array<i32: 1>} : vector<8x8xi32>
    %104 = arith.cmpi sge, %102, %103 : vector<8x8xi32>
    %cst_57 = arith.constant -1.000000e+09 : f32
    %105 = vector.broadcast %cst_57 : f32 to vector<8x8xf32>
    %106 = arith.select %104, %99, %105 : vector<8x8xi1>, vector<8x8xf32>
    %cst_58 = arith.constant dense<0xFF800000> : vector<8xf32>
    %107 = vector.multi_reduction <maximumf>, %106, %cst_58 [1] : vector<8x8xf32> to vector<8xf32>
    %108 = vector.shape_cast %107 : vector<8xf32> to vector<8x1xf32>
    %109 = vector.broadcast %108 : vector<8x1xf32> to vector<8x8xf32>
    %110 = arith.subf %106, %109 : vector<8x8xf32>
    %111 = math.exp %110 : vector<8x8xf32>
    %cst_59 = arith.constant dense<0.000000e+00> : vector<8xf32>
    %112 = vector.multi_reduction <add>, %111, %cst_59 [1] : vector<8x8xf32> to vector<8xf32>
    %113 = vector.shape_cast %112 : vector<8xf32> to vector<8x1xf32>
    %114 = tpu.reciprocal %113 {approx = true} : vector<8x1xf32> -> vector<8x1xf32>
    %115 = vector.broadcast %114 : vector<8x1xf32> to vector<8x8xf32>
    %116 = arith.mulf %111, %115 : vector<8x8xf32>
    %117 = arith.truncf %116 : vector<8x8xf32> to vector<8x8xbf16>
    %cst_60 = arith.constant dense<0.000000e+00> : vector<8x8xf32>
    %118 = tpu.matmul %117, %98, %cst_60 {dimension_numbers = #tpu.dot_dimension_numbers<[1], [0], [0], [1], [0, 0, 1, 1], [], []>} : vector<8x8xbf16>, vector<8x8xbf16>, vector<8x8xf32> -> vector<8x8xf32>
    %119 = arith.truncf %118 : vector<8x8xf32> to vector<8x8xbf16>
    %c0_61 = arith.constant 0 : index
    %c24_62 = arith.constant 24 : index
    %120 = vector.load %arg15[%c0_61, %c24_62] : memref<8x32xbf16, #tpu.memory_space<vmem>>, vector<8x8xbf16>
    tpu.vector_store %arg15[%c0_61, %c24_62], %119 {strides = array<i32>} : memref<8x32xbf16, #tpu.memory_space<vmem>>, vector<8x8xbf16>,
    %c0_63 = arith.constant 0 : index
    %c0_64 = arith.constant 0 : index
    %121 = vector.load %arg15[%c0_63, %c0_64] : memref<8x32xbf16, #tpu.memory_space<vmem>>, vector<8x32xbf16>
    %c0_65 = arith.constant 0 : index
    %c0_66 = arith.constant 0 : index
    %122 = vector.load %arg8[%c0_65, %c0_66] : memref<32x32xbf16, #tpu.memory_space<vmem>>, vector<32x32xbf16>
    %cst_67 = arith.constant dense<0.000000e+00> : vector<8x32xf32>
    %123 = tpu.matmul %121, %122, %cst_67 {dimension_numbers = #tpu.dot_dimension_numbers<[1], [0], [0], [1], [0, 0, 1, 1], [], []>} : vector<8x32xbf16>, vector<32x32xbf16>, vector<8x32xf32> -> vector<8x32xf32>
    %c0_68 = arith.constant 0 : index
    %c0_69 = arith.constant 0 : index
    %124 = vector.load %arg9[%c0_68, %c0_69] : memref<1x32xf32, #tpu.memory_space<vmem>>, vector<1x32xf32>
    %125 = vector.broadcast %124 : vector<1x32xf32> to vector<8x32xf32>
    %126 = arith.addf %123, %125 : vector<8x32xf32>
    %c0_70 = arith.constant 0 : index
    %c0_71 = arith.constant 0 : index
    %c0_72 = arith.constant 0 : index
    %127 = vector.load %arg2[%c0_70, %c0_71, %c0_72] : memref<1x8x32xf32, #tpu.memory_space<vmem>>, vector<1x8x32xf32>
    %128 = vector.shape_cast %127 : vector<1x8x32xf32> to vector<8x32xf32>
    %129 = arith.addf %126, %128 : vector<8x32xf32>
    %cst_73 = arith.constant dense<0.000000e+00> : vector<8xf32>
    %130 = vector.multi_reduction <add>, %129, %cst_73 [1] : vector<8x32xf32> to vector<8xf32>
    %131 = vector.shape_cast %130 : vector<8xf32> to vector<8x1xf32>
    %cst_74 = arith.constant 3.200000e+01 : f32
    %132 = vector.broadcast %cst_74 : f32 to vector<8x1xf32>
    %133 = arith.divf %131, %132 : vector<8x1xf32>
    %134 = vector.broadcast %133 : vector<8x1xf32> to vector<8x32xf32>
    %135 = arith.subf %129, %134 : vector<8x32xf32>
    %136 = arith.mulf %135, %135 : vector<8x32xf32>
    %cst_75 = arith.constant dense<0.000000e+00> : vector<8xf32>
    %137 = vector.multi_reduction <add>, %136, %cst_75 [1] : vector<8x32xf32> to vector<8xf32>
    %138 = vector.shape_cast %137 : vector<8xf32> to vector<8x1xf32>
    %cst_76 = arith.constant 3.200000e+01 : f32
    %139 = vector.broadcast %cst_76 : f32 to vector<8x1xf32>
    %140 = arith.divf %138, %139 : vector<8x1xf32>
    %cst_77 = arith.constant 9.99999974E-6 : f32
    %141 = vector.broadcast %cst_77 : f32 to vector<8x1xf32>
    %142 = arith.addf %140, %141 : vector<8x1xf32>
    %143 = math.rsqrt %142 : vector<8x1xf32>
    %144 = vector.broadcast %143 : vector<8x1xf32> to vector<8x32xf32>
    %145 = arith.mulf %135, %144 : vector<8x32xf32>
    %c0_78 = arith.constant 0 : index
    %c0_79 = arith.constant 0 : index
    %146 = vector.load %arg10[%c0_78, %c0_79] : memref<1x32xf32, #tpu.memory_space<vmem>>, vector<1x32xf32>
    %147 = vector.broadcast %146 : vector<1x32xf32> to vector<8x32xf32>
    %148 = arith.mulf %145, %147 : vector<8x32xf32>
    %c0_80 = arith.constant 0 : index
    %c0_81 = arith.constant 0 : index
    %149 = vector.load %arg11[%c0_80, %c0_81] : memref<1x32xf32, #tpu.memory_space<vmem>>, vector<1x32xf32>
    %150 = vector.broadcast %149 : vector<1x32xf32> to vector<8x32xf32>
    %151 = arith.addf %148, %150 : vector<8x32xf32>
    %152 = arith.truncf %151 : vector<8x32xf32> to vector<8x32xbf16>
    %c0_82 = arith.constant 0 : index
    %c0_83 = arith.constant 0 : index
    %c0_84 = arith.constant 0 : index
    %153 = vector.load %arg12[%c0_82, %c0_83, %c0_84] : memref<1x8x32xbf16, #tpu.memory_space<vmem>>, vector<1x8x32xbf16>
    %154 = vector.shape_cast %153 : vector<1x8x32xbf16> to vector<8x32xbf16>
    %155 = vector.shape_cast %152 : vector<8x32xbf16> to vector<1x8x32xbf16>
    tpu.vector_store %arg12[%c0_82, %c0_83, %c0_84], %155 {strides = array<i32>} : memref<1x8x32xbf16, #tpu.memory_space<vmem>>, vector<1x8x32xbf16>,
    return
  }
  func.func @transform_0(%arg0: i32, %arg1: i32) -> (i32, i32, i32) {
    %c0_i32 = arith.constant 0 : i32
    %c0_i32_0 = arith.constant 0 : i32
    return %arg0, %arg1, %c0_i32 : i32, i32, i32
  }
  func.func @transform_1(%arg0: i32, %arg1: i32) -> (i32, i32, i32) {
    %c0_i32 = arith.constant 0 : i32
    %c0_i32_0 = arith.constant 0 : i32
    %c0_i32_1 = arith.constant 0 : i32
    return %arg0, %c0_i32, %c0_i32_0 : i32, i32, i32
  }
  func.func @transform_2(%arg0: i32, %arg1: i32) -> (i32, i32) {
    %c0_i32 = arith.constant 0 : i32
    %c0_i32_0 = arith.constant 0 : i32
    %c0_i32_1 = arith.constant 0 : i32
    return %c0_i32, %c0_i32_0 : i32, i32
  }
  func.func @transform_3(%arg0: i32, %arg1: i32) -> (i32, i32) {
    %c0_i32 = arith.constant 0 : i32
    %c0_i32_0 = arith.constant 0 : i32
    %c0_i32_1 = arith.constant 0 : i32
    return %c0_i32, %c0_i32_0 : i32, i32
  }
  func.func @transform_4(%arg0: i32, %arg1: i32) -> (i32, i32) {
    %c0_i32 = arith.constant 0 : i32
    %c0_i32_0 = arith.constant 0 : i32
    %c0_i32_1 = arith.constant 0 : i32
    return %c0_i32, %c0_i32_0 : i32, i32
  }
  func.func @transform_5(%arg0: i32, %arg1: i32) -> (i32, i32) {
    %c0_i32 = arith.constant 0 : i32
    %c0_i32_0 = arith.constant 0 : i32
    %c0_i32_1 = arith.constant 0 : i32
    return %c0_i32, %c0_i32_0 : i32, i32
  }
  func.func @transform_6(%arg0: i32, %arg1: i32) -> (i32, i32) {
    %c0_i32 = arith.constant 0 : i32
    %c0_i32_0 = arith.constant 0 : i32
    %c0_i32_1 = arith.constant 0 : i32
    return %c0_i32, %c0_i32_0 : i32, i32
  }
  func.func @transform_7(%arg0: i32, %arg1: i32) -> (i32, i32) {
    %c0_i32 = arith.constant 0 : i32
    %c0_i32_0 = arith.constant 0 : i32
    %c0_i32_1 = arith.constant 0 : i32
    return %c0_i32, %c0_i32_0 : i32, i32
  }
  func.func @transform_8(%arg0: i32, %arg1: i32) -> (i32, i32) {
    %c0_i32 = arith.constant 0 : i32
    %c0_i32_0 = arith.constant 0 : i32
    %c0_i32_1 = arith.constant 0 : i32
    return %c0_i32, %c0_i32_0 : i32, i32
  }
  func.func @transform_9(%arg0: i32, %arg1: i32) -> (i32, i32) {
    %c0_i32 = arith.constant 0 : i32
    %c0_i32_0 = arith.constant 0 : i32
    %c0_i32_1 = arith.constant 0 : i32
    return %c0_i32, %c0_i32_0 : i32, i32
  }
  func.func @transform_10(%arg0: i32, %arg1: i32) -> (i32, i32, i32) {
    %c0_i32 = arith.constant 0 : i32
    %c0_i32_0 = arith.constant 0 : i32
    return %arg0, %arg1, %c0_i32 : i32, i32, i32
  }
}

</mosaic_0001>

<bundles_post_ra>
// kernel: tpu_custom_call.1
= control target key start
LH: loop header
LB: loop body
LE: loop exit
PB: predicated region body
PF: predicated region fallthrough
CT: control target
= control target key end

     0   :  { %s1835_s0 = inlined_call_operand.hbm [shape: f32[2,8,32], index: 0, kind: input, shape index: {}]   ;;  %s1836_s1 = inlined_call_operand.hbm [shape: f32[2,8,32], index: 1, kind: input, shape index: {}]   ;;  %s1837_s2 = inlined_call_operand.hbm [shape: bf16[32,32], index: 2, kind: input, shape index: {}]   ;;  %s1838_s3 = inlined_call_operand.vmem [shape: f32[1,32], index: 3, kind: input, shape index: {}]   ;;  %s1839_s4 = inlined_call_operand.hbm [shape: bf16[32,64], index: 4, kind: input, shape index: {}]   ;;  %s1840_s5 = inlined_call_operand.vmem [shape: f32[1,64], index: 5, kind: input, shape index: {}]   ;;  %s1841_s6 = inlined_call_operand.hbm [shape: bf16[32,32], index: 6, kind: input, shape index: {}]   ;;  %s1842_s7 = inlined_call_operand.vmem [shape: f32[1,32], index: 7, kind: input, shape index: {}]   ;;  %s1843_s8 = inlined_call_operand.vmem [shape: f32[1,32], index: 8, kind: input, shape index: {}]   ;;  %s1844_s9 = inlined_call_operand.vmem [shape: f32[1,32], index: 9, kind: input, shape index: {}]   ;;  %s1845_s10 = inlined_call_operand.hbm [shape: bf16[2,8,32], index: 10, kind: output, shape index: {}]  }
   0x1   :  { %1854 = sst [smem:[#allocation27_spill]] %s1837_s2 }
   0x2   :  { %1855 = sst [smem:[#allocation28_spill]] %s1839_s4 }
   0x3   :  { %1856 = sst [smem:[#allocation29_spill]] %s1841_s6 }
   0x4   :  { %1857 = sst [smem:[#allocation30_spill]] %s1845_s10 }
   0x5   :  { %15 = vsyncpa [#allocation6], 0 }
   0x6   :  { %17 = vsyncpa [#allocation6 + $0x1], 0 }
   0x7   :  { %18 = vsyncpa [#allocation9], 0 }
   0x8   :  { %20 = vsyncpa [#allocation9 + $0x1], 0 }
   0x9   :  { %21 = vsyncpa [#allocation12], 0 }
   0xa   :  { %22 = vsyncpa [#allocation7], 0 }
   0xb   :  { %24 = vsyncpa [#allocation7 + $0x1], 0  ;;  %s1597_s13 = smov 0   ;;  %s1599_s14 = smov 0  }
   0xc   :  { %s1601_s15 = smov 0   ;;  %s1603_s16 = smov 0  }
   0xd   :  { %s1605_s17 = smov 0   ;;  %s1607_s18 = smov 0  }
   0xe LB: > { %1858 = sst [smem:[#allocation20_spill]] %s1504_s13  ;;  %s1628_s19 = sadd.s32 4294967295, %s1524_s18   ;;  %s1524_s18 = sphi %s1607_s18, %s30_s18   ;;  %s1520_s17 = sphi %s1605_s17, %s1885_s17   ;;  %s1516_s16 = sphi %s1603_s16, %s1880_s16   ;;  %s1512_s15 = sphi %s1601_s15, %s1884_s15   ;;  %s1508_s14 = sphi %s1599_s14, %s1883_s14   ;;  %s1504_s13 = sphi %s1597_s13, %s1882_s13  }
   0xf   : > { %1859 = sst [smem:[#allocation21_spill]] %s1512_s15  ;;  %p1083_p0 = scmp.ge.s32.totalorder %s1524_s18, 1 }
  0x10   : > { %1860 = sst [smem:[#allocation22_spill]] %s1520_s17  ;;  %p65_p1 = scmp.eq.s32.totalorder %s1628_s19, 0 }
  0x11   : > { %p297_p2 = scmp.lt.s32.totalorder %s1524_s18, 3  ;;  %s1861_s2 = sld [smem:[#allocation27_spill]] }
  0x12   : > { %s1526_s24 = smov [#allocation10]   ;;  %p1087_p6 = scmp.ge.s32.totalorder %s1524_s18, 2 }
  0x13   : > { %p1636_p3 = pnand %p1083_p0, %p297_p2  ;;  %s310_s25 = sshll.u32 %s1526_s24, 4  ;;  %s311_s25 = int_to_ptr.vmem [resolvable:$true] %s310_s25 }
  0x14   : > { %s1864_s4 = sld [smem:[#allocation28_spill]]  ;;  %s1527_s30 = smov 64  }
  0x15   : > { %p1162_p4 = pneg %p1636_p3  ;;  %s1528_s11 = smov 4  }
  0x16   : > { %s1529_s12 = smov [#allocation11]   ;;  %s1865_s6 = sld [smem:[#allocation29_spill]] }
  0x17   : > { %s308_s22 = sshll.u32 %s1861_s2, 4  ;;  %p1644_p5 = pnand %p1162_p4, %p65_p1  ;;  %s309_s22 = int_to_ptr.hbm [resolvable:$true] %s308_s22 }
  0x18   : > { %s327_s20 = sshll.u32 %s1529_s12, 4  ;;  %s1530_s28 = smov [#allocation13]   ;;  %s328_s20 = int_to_ptr.vmem [resolvable:$true] %s327_s20 }
  0x19   : > { %1165 = dma.hbm_to_vmem [thread:$0]  (!%p1644_p5), %s309_s22, 256, %s311_s25, [#allocation9], %s1527_s30, %s1527_s30, %s1528_s11  }
  0x1a   : > { %s325_s29 = sshll.u32 %s1864_s4, 4  ;;  %s344_s2 = sshll.u32 %s1530_s28, 4  ;;  %s326_s29 = int_to_ptr.hbm [resolvable:$true] %s325_s29  ;;  %s345_s2 = int_to_ptr.vmem [resolvable:$true] %s344_s2 }
  0x1b   : > { %1168 = dma.hbm_to_vmem [thread:$0]  (!%p1644_p5), %s326_s29, 256, %s328_s20, [#allocation12], %s1527_s30, %s1527_s30, %s1528_s11  }
  0x1c   : > { %s342_s27 = sshll.u32 %s1865_s6, 4  ;;  %s1082_s22 = sadd.s32 4294967294, %s1524_s18   ;;  %s343_s27 = int_to_ptr.hbm [resolvable:$true] %s342_s27 }
  0x1d   : > { %1171 = dma.hbm_to_vmem [thread:$0]  (!%p1644_p5), %s343_s27, 256, %s345_s2, [#allocation12], %s1527_s30, %s1527_s30, %s1528_s11  }
  0x1e   : > { %s42_s25 = sadd.s32 1, %s1520_s17  ;;  %s51_s12 = sadd.s32 1, %s1512_s15 }
  0x1f   : > { %p44_p7 = scmp.ge.s32.totalorder %s42_s25, 2  ;;  %p58_p8 = scmp.ne.s32.totalorder %s1512_s15, %s1508_s14 }
  0x20   : > { %p59_p9 = scmp.eq.s32.totalorder %s1524_s18, 0  ;;  %p64_p10 = scmp.ne.s32.totalorder %s1508_s14, %s1504_s13 }
  0x21   : > { %s1887_s25 = smov (%p44_p7, %s42_s25), 0  ;;  %p284_p13 = scmp.eq.s32.totalorder %s1628_s19, 1 }
  0x22   : > { %1866 = sst [smem:[#allocation23_spill]] %s1887_s25  ;;  %p1671_p11 = por %p59_p9, %p58_p8 }
  0x23   : > { %p1677_p12 = por %p65_p1, %p64_p10  ;;  %s46_s26 = ssub.s32 %s1520_s17, %s1887_s25 }
  0x24   : > { %p49_p0 = scmp.eq.s32.totalorder %s46_s26, 0  ;;  %p290_p2 = scmp.eq.s32.totalorder %s1082_s22, 1 }
  0x25   : > { %p1684_p4 = por %p284_p13, %p58_p8  ;;  %p1186_p5 = scmp.lt.s32.totalorder %s1524_s18, 2 }
  0x26   : > { %s1690_s11 = scalar_select %p49_p0, %s1512_s15, %s51_s12  }
  0x27   : > { %s1869_s30 = scalar_select %p1684_p4, 1, 0 }
  0x28   : > { %1871 = sst [smem:[#allocation25_spill]] %s1690_s11  ;;  %p1692_p7 = por %p290_p2, %p64_p10 }
  0x29   : > { %1870 = sst [smem:[#allocation24_spill]] %s1869_s30  ;;  %s367_s21 = sand.u32 1, %s1512_s15  }
  0x2a   : > { %s1872_s20 = scalar_select %p1692_p7, 1, 0 }
  0x2b   : > { %s1088_s24 = sshll.u32 %s367_s21, 3  ;;  %s1089_s27 = sshll.u32 %s1520_s17, 3 }
  0x2c   : > { %1873 = sst [smem:[#allocation26_spill]] %s1872_s20  ;;  %s376_s26 = scalar_lea.hbm %s1835_s0, %s1089_s27 }
  0x2d   : > { %s371_s22 = scalar_lea.vmem [#allocation5], %s1088_s24  ;;  %s378_s25 = sshll.u32 %s376_s26, 4  ;;  %s379_s25 = int_to_ptr.hbm [resolvable:$true] %s378_s25 }
  0x2e   : > { %s380_s6 = sshll.u32 %s371_s22, 4  ;;  %p1173_p8 = pnand %p1186_p5, %p1671_p11  ;;  %s381_s6 = int_to_ptr.vmem [resolvable:$true] %s380_s6 }
  0x2f   : > { %s395_s13 = scalar_lea.hbm %s1836_s1, %s1089_s27  ;;  %s387_s30 = sand.u32 1, %s1524_s18  }
  0x30   : > { %s368_s20 = scalar_lea.sflag [#allocation6], %s367_s21  ;;  %s397_s15 = sshll.u32 %s395_s13, 4  ;;  %s398_s15 = int_to_ptr.hbm [resolvable:$true] %s397_s15 }
  0x31   : > { %1175 = dma.hbm_to_vmem [thread:$0]  (!%p1173_p8), %s379_s25, 128, %s381_s6, %s368_s20  }
  0x32   : > { %s391_s17 = scalar_lea.vmem [#allocation8], %s1088_s24  ;;  %s388_s4 = scalar_lea.sflag [#allocation9], %s387_s30 }
  0x33   : > { %s399_s10 = sshll.u32 %s391_s17, 4  ;;  %408 = sbr.rel (%p1636_p3) target bundleno = 1676 (0x68c), region = 60  ;;  %s400_s10 = int_to_ptr.vmem [resolvable:$true] %s399_s10 }
  0x34   : > { %1178 = dma.hbm_to_vmem [thread:$0]  (!%p1173_p8), %s398_s15, 128, %s400_s10, %s388_s4  }
  0x35   : > { %s1710_s29 = sand.u32 (!%p1636_p3), 1, %s1508_s14  }
  0x36   : > { %s1093_s11 = sshll.u32 (!%p1636_p3), %s1710_s29, 3  ;;  %s411_s27 = scalar_lea.sflag (!%p1636_p3), [#allocation6], %s1710_s29 }
  0x37   : > { %s414_s21 = scalar_lea.vmem (!%p1636_p3), [#allocation5], %s1093_s11 }
  0x38   : > { %1483 = dma.done.wait (%p1677_p12), %s411_s27, 128  }
  0x39   : > { %1485 = vsyncadd (%p1677_p12), %s411_s27, 4294967168  ;;  %s420_s6 = sand.u32 1, %s1628_s19   ;;  %s424_s13 = scalar_lea.vmem [#allocation8], %s1093_s11 }
  0x3a   : > { %s421_s10 = scalar_lea.sflag [#allocation9], %s420_s6 }
  0x3b   : > { %1487 = dma.done.wait (%p1677_p12), %s421_s10, 128  }
  0x3c   : > { %1489 = vsyncadd (%p1677_p12), %s421_s10, 4294967168 }
  0x3d   : > { %1491 = dma.done.wait (%p65_p1), [#allocation9], 256  }
  0x3e   : > { %1493 = vsyncadd (%p65_p1), [#allocation9], 4294967040 }
  0x3f   : > { %1495 = dma.done.wait (%p65_p1), [#allocation12], 512  }
  0x40   : > { %1497 = vsyncadd (%p65_p1), [#allocation12], 4294966784  ;;  %v1139_v0 = vld [vmem:[#allocation10 + $0x8] sm:$0xff]  ;;  %v1141_v1 = vld [vmem:[#allocation11 + $0x8] sm:$0xff]  ;;  %vm507_vm0 = vcmask 261120   ;;  %vm525_vm1 = vcmask 257024   ;;  %v589_v45 = vlaneseq }
  0x41   : > { %v1138_v2 = vld [vmem:[#allocation10] sm:$0xff]  ;;  %v1140_v3 = vld [vmem:[#allocation11] sm:$0xff]  ;;  %517 = vmatpush.bf16.msra.mxu0 %v1139_v0  ;;  %556 = vmatpush.bf16.msra.mxu1 %v1141_v1  ;;  %vm564_vm2 = vcmask 519168   ;;  %vm569_vm3 = vcmask 64512   ;;  %s1531_s25 = smov 120   ;;  %s1532_s2 = smov 96  }
  0x42   : > { %v1731_v4 = vld [vmem:[%s414_s21] sm:$0xff]  ;;  %v485_v5 = vld [vmem:[%s424_s13] sm:$0xff]  ;;  %s1533_s30 = smov 112   ;;  %s1534_s20 = smov 104   ;;  %vm617_vm4 = vcmask 1043456   ;;  %v590_v46 = vshrl.u32 %v589_v45, 7 }
  0x43   : > { %v484_v6 = vpack.c.bf16 %v1731_v4, %v1731_v4  ;;  %v486_v7 = vpack.c.bf16 %v485_v5, %v485_v5  ;;  %v1255_v8 = vld [vmem:[%s1838_s3] ss:$0 sm:$0xff]  ;;  %v594_v47 = vand.u32 127, %v589_v45  ;;  %vm635_vm6 = vcmask 60416   ;;  %s1535_s24 = smov 88   ;;  %s1536_s28 = smov 80  }
  0x44   : > { %v1256_v9 = vld [vmem:[%s1840_s5] ss:$0 sm:$0xff]  ;;  %s1537_s26 = smov 72   ;;  %s1538_s22 = smov 8   ;;  %vm707_vm7 = vcmask 126016   ;;  %vm779_vm8 = vcmask 191616  }
  0x45   : > { %518 = vmatpush.bf16.msra.mxu0 %v1138_v2  ;;  %557 = vmatpush.bf16.msra.mxu1 %v1140_v3  ;;  %vm595_vm5 = vcmp.ge.s32.totalorder %v590_v46, %v594_v47  ;;  %s1539_s12 = smov 16   ;;  %s1540_s4 = smov 24   ;;  %vm851_vm9 = vcmask 257216  }
  0x46   : > { %s1098_s21 = sshll.u32 %s1710_s29, 2  ;;  %s1135_s6 = sshll.u32 %s1516_s16, 2 }
  0x48   : > { %1107 = vmatmul.msk.bf16.vlgmr.msra.gmra.mxu0 %vm507_vm0, %v484_v6  ;;  %1116 = vmatmul.msk.bf16.vlgmr.msra.gmra.mxu1 %vm507_vm0, %v486_v7 }
  0xc5   : > { %v520_v10 = vpop.f32.mrf.mxu0  ;;  %v559_v11 = vpop.f32.mrf.mxu1 }
  0xc6   : > { %v521_v12 = vadd.f32 %v1255_v8, %v520_v10  ;;  %v560_v13 = vadd.f32 %v1256_v9, %v559_v11 }
  0xc8   : > { %v524_v14 = vpack.c.bf16 %v521_v12, %v521_v12  ;;  %v563_v15 = vpack.c.bf16 %v560_v13, %v560_v13 }
  0xca   : > { %526 = vst.msk [vmem:[#allocation2] sm:$0xf] %vm525_vm1, %v524_v14 }
  0xcb   : > { %565 = vst.msk [vmem:[#allocation3] sm:$0xf] %vm564_vm2, %v563_v15 }
  0xcd   : > { %v522_v16 = vpop.f32.mrf.mxu0  ;;  %v561_v17 = vpop.f32.mrf.mxu1 }
  0xd1   : > { %v637_v18 = vld [vmem:[#allocation2] sm:$0xf] }
  0xd2   : > { %v568_v19 = vld [vmem:[#allocation3] sm:$0xf]  ;;  %v640_v20 = vunpack.c.l.b16 %v637_v18  ;;  %v567_v27 = vld [vmem:[#allocation2] sm:$0xf] }
  0xd3   : > { %v574_v21 = vsel %vm569_vm3, %v568_v19, 0  ;;  %v610_v22 = vunpack.c.l.b16 %v568_v19  ;;  %v710_v25 = vld [vmem:[#allocation3] sm:$0xf]  ;;  %v781_v32 = vld [vmem:[#allocation2] sm:$0xf] }
  0xd4   : > { %583 = vmatpush.bf16.xpose.msra.mxu2 %v574_v21  ;;  %v641_v23 = vpack.c.b16 %v640_v20, %v640_v20  ;;  %v638_v26 = vld [vmem:[#allocation3] sm:$0xf]  ;;  %v717_v28 = vunpack.c.l.b16 %v710_v25  ;;  %v709_v33 = vld [vmem:[#allocation2] sm:$0xf]  ;;  %v784_v34 = vunpack.c.l.b16 %v781_v32 }
  0xd5   : > { %v611_v24 = vpack.c.b16 %v610_v22, %v610_v22  ;;  %v645_v29 = vunpack.c.l.b16 %v638_v26  ;;  %v712_v35 = vunpack.c.l.b16 %v709_v33  ;;  %v782_v62 = vld [vmem:[#allocation3] sm:$0xf] }
  0xd6   : > { %642 = vrot.lane.b32.xlu2 %v641_v23, %s1531_s25  ;;  %v1746_v30 = vpack.c.b16 %v717_v28, %v717_v28  ;;  %v785_v36 = vpack.c.b16 %v784_v34, %v784_v34  ;;  %v789_v63 = vunpack.c.l.b16 %v782_v62  ;;  %v1143_v62 = vld [vmem:[#allocation13 + $0x8] sm:$0xff] }
  0xd7   : > { %612 = vrot.lane.b32.xlu1 %v611_v24, %s1532_s2  ;;  %v1748_v31 = vpack.c.b16 %v645_v29, %v645_v29  ;;  %v713_v37 = vpack.c.b16 %v712_v35, %v712_v35 }
  0xd8   : > { %v790_v0 = vpack.c.b16 %v789_v63, %v789_v63  ;;  %v1142_v63 = vld [vmem:[#allocation13] sm:$0xff] }
  0xdb   : > { %1117 = vmatmul.msk.bf16.vlgmr.msra.gmra.mxu2 %vm569_vm3, %v567_v27 }
  0xde   : > { %719 = vrot.lane.b32.xlu2 %v1746_v30, %s1533_s30 }
  0xdf   : > { %647 = vrot.lane.b32.xlu1 %v1748_v31, %s1531_s25  ;;  %s1874_s25 = sld [smem:[#allocation30_spill]] }
  0xe5   : > { %s1450_s11 = scalar_lea.hbm %s1874_s25, 8 }
  0xe6   : > { %786 = vrot.lane.b32.xlu2 %v785_v36, %s1534_s20 }
  0xe7   : > { %714 = vrot.lane.b32.xlu1 %v713_v37, %s1533_s30  ;;  %s945_s30 = scalar_lea.hbm %s1874_s25, %s1135_s6 }
 0x130   : > { %v643_v38 = vpop.permute.xlu2 %642 }
 0x138   : > { %v720_v39 = vpop.permute.xlu2 %719 }
 0x139   : > { %v725_v40 = vsel %vm569_vm3, %v720_v39, 0 }
 0x13a   : > { %734 = vmatpush.bf16.xpose.msrb.mxu1 %v725_v40 }
 0x140   : > { %v787_v1 = vpop.permute.xlu2 %786 }
 0x142   : > { %883 = vmatpush.bf16.msra.mxu1 %v1143_v62 }
 0x146   : > { %884 = vmatpush.bf16.msra.mxu1 %v1142_v63 }
 0x149   : > { %v613_v41 = vpop.permute.xlu1 %612 }
 0x14a   : > { %v619_v42 = vsel %vm617_vm4, %v613_v41, 0 }
 0x14b   : > { %628 = vmatpush.bf16.msra.mxu3 %v619_v42 }
 0x151   : > { %v648_v43 = vpop.permute.xlu1 %647 }
 0x152   : > { %v653_v44 = vsel %vm569_vm3, %v648_v43, 0 }
 0x153   : > { %662 = vmatpush.bf16.xpose.msrb.mxu3 %v653_v44 }
 0x159   : > { %v715_v48 = vpop.permute.xlu1 %714 }
 0x15a   : > { %1121 = vmatmul.msk.bf16.vlgmr.msrb.gmra.mxu1 %vm569_vm3, %v715_v48 }
 0x15e   : > { %v585_v49 = vpop.f32.mrf.mxu2 }
 0x15f   : > { %v596_v50 = vsel %vm595_vm5, %v585_v49, -1e+09 }
 0x160   : > { %v597_v51 = vsel %vm569_vm3, %v596_v50, -inf }
 0x161   : > { %598 = vmax.xlane.f32.xlu0 %v597_v51 }
 0x166   : > { %v587_v52 = vpop.f32.mrf.mxu2 }
 0x1d4   : > { %v599_v53 = vpop.xlane.xlu0 %598 }
 0x1d5   : > { %v600_v54 = vsub.f32 %v596_v50, %v599_v53 }
 0x1d7   : > { %v601_v55 = vmul.f32 1.442695, %v600_v54  ;;  %v736_v56 = vpop.f32.mrf.mxu1 }
 0x1d8   : > { %v740_v57 = vsel %vm595_vm5, %v736_v56, -1e+09 }
 0x1d9   : > { %1260 = vpow2.f32 %v601_v55  ;;  %v741_v58 = vsel %vm569_vm3, %v740_v57, -inf }
 0x1da   : > { %742 = vmax.xlane.f32.xlu2 %v741_v58 }
 0x1df   : > { %v1261_v59 = vpop.eup %1260  ;;  %v738_v60 = vpop.f32.mrf.mxu1 }
 0x1e0   : > { %v603_v61 = vsel %vm569_vm3, %v1261_v59, 0.0 }
 0x1e1   : > { %604 = vadd.xlane.f32.xlu0 %v603_v61 }
 0x1f5   : > { %791 = vrot.lane.b32.xlu0 %v790_v0, %s1534_s20  ;;  %s481_s20 = scalar_lea.vmem [#allocation14], %s1098_s21 }
 0x1f6   : > { %s947_s16 = sshll.u32 %s481_s20, 4  ;;  %s948_s16 = int_to_ptr.vmem [resolvable:$true] %s947_s16 }
 0x24d   : > { %v743_v2 = vpop.xlane.xlu2 %742 }
 0x24e   : > { %v744_v3 = vsub.f32 %v740_v57, %v743_v2 }
 0x250   : > { %v745_v5 = vmul.f32 1.442695, %v744_v3 }
 0x252   : > { %1262 = vpow2.f32 %v745_v5  ;;  %v1257_v5 = vld [vmem:[%s1842_s7] ss:$0 sm:$0xff] }
 0x254   : > { %v605_v6 = vpop.xlane.xlu0 %604 }
 0x255   : > { %1264 = vrcp.f32 %v605_v6 }
 0x258   : > { %v1263_v7 = vpop.eup %1262 }
 0x259   : > { %v747_v8 = vsel %vm569_vm3, %v1263_v7, 0.0 }
 0x25a   : > { %748 = vadd.xlane.f32.xlu2 %v747_v8 }
 0x25b   : > { %v1265_v9 = vpop.eup %1264 }
 0x25c   : > { %v607_v10 = vmul.f32 %v1265_v9, %v1261_v59 }
 0x25e   : > { %v608_v11 = vpack.c.bf16 %v607_v10, %v607_v10 }
 0x260   : > { %1118 = vmatmul.msk.bf16.vlgmr.msra.gmra.mxu3 %vm569_vm3, %v608_v11  ;;  %v1541_v11 = vmov 32.0  }
 0x267   : > { %v792_v12 = vpop.permute.xlu0 %791 }
 0x268   : > { %v797_v13 = vsel %vm569_vm3, %v792_v12, 0 }
 0x269   : > { %806 = vmatpush.bf16.xpose.msra.mxu3 %v797_v13 }
 0x270   : > { %1119 = vmatmul.msk.bf16.vlgmr.msrb.gmra.mxu3 %vm569_vm3, %v643_v38 }
 0x280   : > { %1123 = vmatmul.msk.bf16.vlgmr.msra.gmra.mxu3 %vm569_vm3, %v787_v1 }
 0x2e3   : > { %v630_v14 = vpop.f32.mrf.mxu3 }
 0x2e4   : > { %v634_v15 = vpack.c.bf16 %v630_v14, %v630_v14 }
 0x2e6   : > { %636 = vst.msk [vmem:[#allocation4] sm:$0xf] %vm635_vm6, %v634_v15 }
 0x2eb   : > { %v632_v16 = vpop.f32.mrf.mxu3 }
 0x2f3   : > { %v664_v17 = vpop.f32.mrf.mxu3 }
 0x2f4   : > { %v668_v18 = vsel %vm595_vm5, %v664_v17, -1e+09 }
 0x2f5   : > { %v669_v19 = vsel %vm569_vm3, %v668_v18, -inf }
 0x2f6   : > { %670 = vmax.xlane.f32.xlu1 %v669_v19 }
 0x2fb   : > { %v666_v20 = vpop.f32.mrf.mxu3 }
 0x303   : > { %v808_v21 = vpop.f32.mrf.mxu3 }
 0x304   : > { %v812_v22 = vsel %vm595_vm5, %v808_v21, -1e+09 }
 0x305   : > { %v813_v23 = vsel %vm569_vm3, %v812_v22, -inf }
 0x306   : > { %814 = vmax.xlane.f32.xlu0 %v813_v23 }
 0x30b   : > { %v810_v24 = vpop.f32.mrf.mxu3 }
 0x30f   : > { %681 = vrot.lane.b32.xlu1 %v1748_v31, %s1535_s24  ;;  %v749_v31 = vpop.xlane.xlu2 %748  ;;  %s949_s24 = sshll.u32 %s945_s30, 4  ;;  %s950_s24 = int_to_ptr.hbm [resolvable:$true] %s949_s24 }
 0x369   : > { %v671_v25 = vpop.xlane.xlu1 %670 }
 0x36a   : > { %v672_v26 = vsub.f32 %v668_v18, %v671_v25 }
 0x36c   : > { %v673_v27 = vmul.f32 1.442695, %v672_v26 }
 0x36e   : > { %1266 = vpow2.f32 %v673_v27 }
 0x374   : > { %v1267_v28 = vpop.eup %1266 }
 0x375   : > { %v675_v29 = vsel %vm569_vm3, %v1267_v28, 0.0 }
 0x376   : > { %676 = vadd.xlane.f32.xlu2 %v675_v29 }
 0x379   : > { %v815_v32 = vpop.xlane.xlu0 %814 }
 0x37a   : > { %v816_v33 = vsub.f32 %v812_v22, %v815_v32 }
 0x37c   : > { %v817_v34 = vmul.f32 1.442695, %v816_v33  ;;  %v1258_v33 = vld [vmem:[%s1843_s8] ss:$0 sm:$0xff] }
 0x37e   : > { %1268 = vpow2.f32 %v817_v34 }
 0x37f   : > { %1270 = vrcp.f32 %v749_v31 }
 0x381   : > { %v682_v35 = vpop.permute.xlu1 %681 }
 0x382   : > { %v687_v36 = vsel %vm617_vm4, %v682_v35, 0  ;;  %v1259_v35 = vld [vmem:[%s1844_s9] ss:$0 sm:$0xff] }
 0x383   : > { %696 = vmatpush.bf16.msrb.mxu0 %v687_v36 }
 0x384   : > { %v1269_v37 = vpop.eup %1268 }
 0x385   : > { %v819_v38 = vsel %vm569_vm3, %v1269_v37, 0.0  ;;  %v1271_v40 = vpop.eup %1270 }
 0x386   : > { %820 = vadd.xlane.f32.xlu0 %v819_v38  ;;  %v751_v42 = vmul.f32 %v1271_v40, %v1263_v7 }
 0x388   : > { %v752_v47 = vpack.c.bf16 %v751_v42, %v751_v42 }
 0x38e   : > { %753 = vrot.lane.b32.xlu2 %v1746_v30, %s1536_s28  ;;  %s934_s28 = scalar_lea.sflag [#allocation7], %s1710_s29 }
 0x39a   : > { %825 = vrot.lane.b32.xlu0 %v790_v0, %s1537_s26  ;;  %s1444_s26 = sshra.s32 %s950_s24, 4  ;;  %s1445_s26 = int_to_ptr.hbm [resolvable:$true] %s1444_s26 }
 0x39b   : > { %p1451_p10 = scmp.lt.s32.totalorder %s1445_s26, %s1874_s25 }
 0x3e9   : > { %v677_v39 = vpop.xlane.xlu2 %676 }
 0x3ea   : > { %1272 = vrcp.f32 %v677_v39 }
 0x3f0   : > { %v1273_v41 = vpop.eup %1272 }
 0x3f1   : > { %v679_v43 = vmul.f32 %v1273_v41, %v1267_v28  ;;  %v754_v44 = vpop.permute.xlu2 %753 }
 0x3f2   : > { %v759_v45 = vsel %vm617_vm4, %v754_v44, 0 }
 0x3f3   : > { %768 = vmatpush.bf16.msrb.mxu2 %v759_v45  ;;  %v680_v46 = vpack.c.bf16 %v679_v43, %v679_v43 }
 0x3f5   : > { %1120 = vmatmul.msk.bf16.vlgmr.msrb.gmra.mxu0 %vm569_vm3, %v680_v46 }
 0x3f6   : > { %1122 = vmatmul.msk.bf16.vlgmr.msrb.gmra.mxu2 %vm569_vm3, %v752_v47 }
 0x3f9   : > { %v821_v30 = vpop.xlane.xlu0 %820 }
 0x3fa   : > { %1274 = vrcp.f32 %v821_v30 }
 0x3fb   : > { %1276 = vrcp.f32 %v1541_v11 }
 0x400   : > { %v1275_v48 = vpop.eup %1274 }
 0x401   : > { %v823_v49 = vmul.f32 %v1275_v48, %v1269_v37  ;;  %v1277_v12 = vpop.eup %1276 }
 0x402   : > { %v896_v13 = vmul.f32 32.0, %v1277_v12  ;;  %vm900_vm10 = vweird.f32 %v1277_v12 }
 0x403   : > { %v824_v52 = vpack.c.bf16 %v823_v49, %v823_v49 }
 0x404   : > { %v897_v14 = vsub.f32 1.0, %v896_v13 }
 0x406   : > { %v898_v15 = vmul.f32 %v1277_v12, %v897_v14 }
 0x408   : > { %v899_v16 = vadd.f32 %v1277_v12, %v898_v15 }
 0x40a   : > { %v901_v17 = vsel %vm900_vm10, %v1277_v12, %v899_v16 }
 0x40c   : > { %v826_v50 = vpop.permute.xlu0 %825 }
 0x40d   : > { %v831_v51 = vsel %vm617_vm4, %v826_v50, 0 }
 0x40e   : > { %840 = vmatpush.bf16.msra.mxu0 %v831_v51 }
 0x411   : > { %1124 = vmatmul.msk.bf16.vlgmr.msra.gmra.mxu0 %vm569_vm3, %v824_v52 }
 0x472   : > { %v698_v53 = vpop.f32.mrf.mxu0 }
 0x473   : > { %v702_v54 = vpack.c.bf16 %v698_v53, %v698_v53 }
 0x475   : > { %704 = vrot.lane.b32.xlu1 %v702_v54, %s1538_s22  ;;  %s1446_s22 = scalar_lea.hbm %s1445_s26, 4 }
 0x476   : > { %p1447_p1 = scmp.ne.s32.totalorder %s1445_s26, %s1446_s22  ;;  %p1452_p11 = scmp.lt.s32.totalorder %s1450_s11, %s1446_s22 }
 0x478   : > { %p1448_p3 = pnand %p1447_p1, %p1684_p4  ;;  %p1453_p12 = por %p1452_p11, %p1451_p10 }
 0x479   : > { %v770_v55 = vpop.f32.mrf.mxu2 }
 0x47a   : > { %v774_v56 = vpack.c.bf16 %v770_v55, %v770_v55  ;;  %v700_v57 = vpop.f32.mrf.mxu0  ;;  %p1449_p9 = pneg %p1448_p3 }
 0x47c   : > { %p1454_p13 = pnand %p1453_p12, %p1449_p9 }
 0x47d   : > { %776 = vrot.lane.b32.xlu1 %v774_v56, %s1539_s12 }
 0x481   : > { %v772_v58 = vpop.f32.mrf.mxu2 }
 0x48e   : > { %v842_v59 = vpop.f32.mrf.mxu0 }
 0x48f   : > { %v846_v60 = vpack.c.bf16 %v842_v59, %v842_v59 }
 0x491   : > { %848 = vrot.lane.b32.xlu2 %v846_v60, %s1540_s4 }
 0x496   : > { %v844_v61 = vpop.f32.mrf.mxu0 }
 0x4e7   : > { %v705_v0 = vpop.permute.xlu1 %704 }
 0x4e8   : > { %708 = vst.msk [vmem:[#allocation4] sm:$0xf] %vm707_vm7, %v705_v0 }
 0x4eb   : > { %v849_v2 = vpop.permute.xlu2 %848 }
 0x4ef   : > { %v777_v1 = vpop.permute.xlu1 %776 }
 0x4f0   : > { %780 = vst.msk [vmem:[#allocation4] sm:$0xf] %vm779_vm8, %v777_v1 }
 0x4f1   : > { %852 = vst.msk [vmem:[#allocation4] sm:$0xf] %vm851_vm9, %v849_v2 }
 0x4f8   : > { %v853_v3 = vld [vmem:[#allocation4] sm:$0xf] }
 0x4f9   : > { %1133 = vmatmul.msk.bf16.vlgmr.msra.gmra.mxu1 %vm507_vm0, %v853_v3 }
 0x576   : > { %v886_v6 = vpop.f32.mrf.mxu1 }
 0x577   : > { %v887_v7 = vadd.f32 %v1257_v5, %v886_v6 }
 0x579   : > { %v891_v8 = vadd.f32 %v887_v7, %v1731_v4 }
 0x57b   : > { %v892_v9 = vsel %vm507_vm0, %v891_v8, 0.0 }
 0x57c   : > { %893 = vadd.xlane.f32.xlu0 %v892_v9 }
 0x57e   : > { %v888_v10 = vpop.f32.mrf.mxu1 }
 0x5ef   : > { %v894_v18 = vpop.xlane.xlu0 %893 }
 0x5f0   : > { %v902_v19 = vmul.f32 %v901_v17, %v894_v18 }
 0x5f2   : > { %v903_v20 = vsub.f32 %v891_v8, %v902_v19 }
 0x5f4   : > { %v904_v21 = vmul.f32 %v903_v20, %v903_v20 }
 0x5f6   : > { %v905_v4 = vsel %vm507_vm0, %v904_v21, 0.0 }
 0x5f7   : > { %906 = vadd.xlane.f32.xlu1 %v905_v4 }
 0x66a   : > { %v907_v22 = vpop.xlane.xlu1 %906 }
 0x66b   : > { %v908_v23 = vmul.f32 %v907_v22, %v901_v17 }
 0x66d   : > { %v909_v24 = vadd.f32 1e-05, %v908_v23 }
 0x66f   : > { %1278 = vrsqrt.f32 %v909_v24  ;;  %vm916_vm12 = vweird.f32 %v909_v24 }
 0x675   : > { %v1279_v25 = vpop.eup %1278 }
 0x676   : > { %v911_v26 = vmul.f32 %v1279_v25, %v909_v24  ;;  %vm917_vm11 = vweird.f32 %v1279_v25 }
 0x677   : > { %vm918_vm13 = vmor %vm916_vm12, %vm917_vm11 }
 0x678   : > { %v912_v27 = vmul.f32 %v1279_v25, %v911_v26 }
 0x67a   : > { %v913_v28 = vmul.f32 0.5, %v912_v27 }
 0x67c   : > { %v914_v29 = vsub.f32 1.5, %v913_v28 }
 0x67e   : > { %v915_v32 = vmul.f32 %v1279_v25, %v914_v29 }
 0x680   : > { %v919_v34 = vsel %vm918_vm13, %v1279_v25, %v915_v32 }
 0x681   : > { %v920_v36 = vmul.f32 %v919_v34, %v903_v20 }
 0x683   : > { %v925_v37 = vmul.f32 %v1258_v33, %v920_v36 }
 0x685   : > { %v930_v38 = vadd.f32 %v1259_v35, %v925_v37 }
 0x687   : > { %v931_v31 = vpack.c.bf16 %v930_v38, %v930_v38 }
 0x689   : > { %932 = vst.msk [vmem:[%s481_s20] sm:$0xf] %vm525_vm1, %v931_v31 }
 0x68a   : > { %1457 = shalt.err (!%p1454_p13)
}
 0x68b   : > { %1160 = dma.vmem_to_hbm [thread:$0]  (%p1684_p4), %s948_s16, 64, %s950_s24, %s934_s28  }
 0x68c PF: > { %s1876_s29 = sld [smem:[#allocation20_spill]]  ;;  %p1180_p0 = pnand %p1087_p6, %p1692_p7 }
 0x68e   : > { %p1181_p2 = pneg %p1180_p0 }
 0x692   : > { %s961_s10 = sand.u32 1, %s1876_s29  }
 0x693   : > { %s962_s13 = scalar_lea.sflag [#allocation7], %s961_s10 }
 0x694   : > { %1499 = dma.done.wait (%p1181_p2), %s962_s13, 64  }
 0x695   : > { %1501 = vsyncadd (%p1181_p2), %s962_s13, 4294967232  ;;  %s30_s18 = sadd.s32 1, %s1524_s18   ;;  %s1878_s15 = sld [smem:[#allocation21_spill]] }
 0x696   : > { %p27_p5 = scmp.ge.s32.totalorder %s30_s18, 4   ;;  %s1879_s17 = sld [smem:[#allocation25_spill]] }
 0x697   : > { %s1880_s16 = sld [smem:[#allocation22_spill]]  ;;  %s1882_s13 = smov %s1508_s14 }
 0x698   : > { %s1881_s19 = sld [smem:[#allocation23_spill]] }
 0x69a   :  { %29 = sbr.rel (!%p27_p5) target bundleno = 14 (0xe), region = 130 }
 0x69b   : > { %s1883_s14 = smov %s1878_s15 }
 0x69c   : > { %s1884_s15 = smov %s1879_s17 }
 0x69e   : > { %s1885_s17 = smov %s1881_s19 }
 0x69f   :  { %968 = vsyncpa [#allocation6], 1 }
 0x6a0   :  { %970 = vsyncpa [#allocation6 + $0x1], 1 }
 0x6a1   :  { %971 = vsyncpa [#allocation9], 1 }
 0x6a2   :  { %973 = vsyncpa [#allocation9 + $0x1], 1 }
 0x6a3   :  { %974 = vsyncpa [#allocation12], 1 }
 0x6a4   :  { %975 = vsyncpa [#allocation7], 1 }
 0x6a5   :  { %977 = vsyncpa [#allocation7 + $0x1], 1 }

</bundles_post_ra>
